<compile_context>
chip_gen: v6e
topology: v6e:2x2x1
jax: 0.10.0
libtpu: 0.0.40
codegen_flags: <defaults>
</compile_context>

<pallas_src>
import functools

import jax
import jax.numpy as jnp
from jax.experimental import pallas as pl
from jax.experimental.pallas import tpu as pltpu

EPS = 1e-5  # PyTorch BatchNorm2d default


# --------------------------------------------------------------------------
# Path A: single-pass kernel (one channel-tile slab resident in VMEM)
# --------------------------------------------------------------------------
def _bn_single_pass_kernel(x_ref, gamma_ref, beta_ref, o_ref, *, inv_count, eps):
    """grid = (channel_tiles,); block = (N, C_tile, H*W)."""
    xf = x_ref[...].astype(jnp.float32)                  # (N, Ct, L)
    # Lane-dense partials: reduce batch axis first (plain VPU adds), then a
    # single cross-lane XLU reduce per channel tile.
    s_cl = jnp.sum(xf, axis=0)                           # (Ct, L)
    q_cl = jnp.sum(xf * xf, axis=0)                      # (Ct, L)
    s = jnp.sum(s_cl, axis=1, keepdims=True)             # (Ct, 1)
    q = jnp.sum(q_cl, axis=1, keepdims=True)             # (Ct, 1)
    mean = s * inv_count
    var = jnp.maximum(q * inv_count - mean * mean, 0.0)  # biased var (train-mode norm)
    inv = jax.lax.rsqrt(var + eps)
    scale = gamma_ref[...] * inv                         # (Ct, 1)
    shift = beta_ref[...] - mean * scale                 # (Ct, 1)
    o_ref[...] = (xf * scale[None] + shift[None]).astype(o_ref.dtype)


# --------------------------------------------------------------------------
# Path B: two-sweep kernel (statistics sweep + normalize sweep)
# --------------------------------------------------------------------------
def _bn_two_sweep_kernel(x_ref, gamma_ref, beta_ref, o_ref,
                         sum_acc, sq_acc, scale_sc, shift_sc,
                         *, inv_count, eps):
    """grid = (channel_tiles, 2, lane_tiles); block = (N, C_tile, L_tile)."""
    p = pl.program_id(1)   # sweep: 0 = statistics, 1 = normalize
    t = pl.program_id(2)   # lane-tile index within H*W

    @pl.when((p == 0) & (t == 0))
    def _init():
        sum_acc[...] = jnp.zeros_like(sum_acc)
        sq_acc[...] = jnp.zeros_like(sq_acc)

    @pl.when(p == 0)
    def _accumulate():
        xf = x_ref[...].astype(jnp.float32)            # (N, Ct, Lt)
        # Lane-dense partial sums: reduce only the batch axis (VPU adds that
        # co-issue with the loads); keep the lane axis so the expensive
        # cross-lane reduce runs once per channel tile, not once per step.
        sum_acc[...] += jnp.sum(xf, axis=0)            # (Ct, Lt)
        sq_acc[...] += jnp.sum(xf * xf, axis=0)        # (Ct, Lt)

    @pl.when((p == 1) & (t == 0))
    def _finalize_stats():
        s = jnp.sum(sum_acc[...], axis=1, keepdims=True)   # (Ct, 1)  single XLU reduce
        q = jnp.sum(sq_acc[...], axis=1, keepdims=True)    # (Ct, 1)
        mean = s * inv_count
        var = jnp.maximum(q * inv_count - mean * mean, 0.0)
        inv = jax.lax.rsqrt(var + eps)
        scale = gamma_ref[...] * inv                        # (Ct, 1)
        scale_sc[...] = scale
        shift_sc[...] = beta_ref[...] - mean * scale

    @pl.when(p == 1)
    def _normalize():
        xf = x_ref[...].astype(jnp.float32)
        y = xf * scale_sc[...][None] + shift_sc[...][None]   # one mul + one add / elem
        o_ref[...] = y.astype(o_ref.dtype)


# --------------------------------------------------------------------------
# Tiling heuristics
# --------------------------------------------------------------------------
def _granule(itemsize):
    return {4: 8, 2: 16, 1: 32}.get(itemsize, 8)


def _pick_channel_tile_full_l(c, n, l, itemsize, budget_bytes):
    """Channel tile for the single-pass path (block spans full batch+spatial).

    Returns None if no legal channel tile keeps one block within budget.
    """
    if n * c * l * itemsize <= budget_bytes:
        return c                       # whole-C slab fits
    granule = _granule(itemsize)
    if c % granule != 0:
        return None                    # cannot subdivide C legally
    tile = granule
    if n * tile * l * itemsize > budget_bytes:
        return None                    # even the smallest legal tile is too big
    while c % (tile * 2) == 0 and n * (tile * 2) * l * itemsize <= budget_bytes:
        tile *= 2
    return tile


def _pick_lane_tile(l):
    """Largest multiple-of-128 divisor of l, capped at 512 lanes."""
    for cand in (512, 384, 256, 128):
        if l % cand == 0:
            return cand
    return l  # small / odd spatial extent: use the full (untiled) lane dim


def _pick_channel_tile(c, n, l_tile, itemsize, budget_bytes=2 << 20):
    """Multiple-of-sublane-granule divisor of c keeping one block <= ~2 MiB."""
    granule = _granule(itemsize)
    if c % granule != 0:
        return c  # tiny / odd C: full-dim block is always legal
    tile = granule
    while (c % (tile * 2) == 0
           and n * (tile * 2) * l_tile * itemsize <= budget_bytes):
        tile *= 2
    return tile


# --------------------------------------------------------------------------
# Public wrapper (mirrors batch_norm_multiple.forward((x, name_bn)))
# --------------------------------------------------------------------------
def batch_norm_multiple_forward(x_nchw, name_bn, params, bn_names_dict,
                                *, c_tile=None, l_tile=None, eps=EPS,
                                single_pass_budget_bytes=2 << 20):
    """JAX/Pallas equivalent of batch_norm_multiple.forward((x, name_bn)).

    params: {'weight': (num_bns, C) f32, 'bias': (num_bns, C) f32}
    bn_names_dict: {name: index}; a None name selects the single BN at index 0
    (matching the bn_names=None branch of the PyTorch module).
    """
    bn_index = 0 if name_bn is None else bn_names_dict[name_bn]

    n, c, h, w = x_nchw.shape
    l = h * w
    x3 = x_nchw.reshape(n, c, l)          # free reshape -- no transpose / HBM pass

    gamma = params["weight"][bn_index].reshape(c, 1).astype(jnp.float32)
    beta = params["bias"][bn_index].reshape(c, 1).astype(jnp.float32)

    itemsize = jnp.dtype(x3.dtype).itemsize
    inv_count = 1.0 / float(n * l)

    # ---- Path A: single pass (2 HBM passes) when a channel-tile slab fits ----
    if c_tile is None and l_tile is None:
        ct = _pick_channel_tile_full_l(c, n, l, itemsize, single_pass_budget_bytes)
        if ct is not None:
            kernel = functools.partial(_bn_single_pass_kernel,
                                       inv_count=inv_count, eps=float(eps))
            out3 = pl.pallas_call(
                kernel,
                out_shape=jax.ShapeDtypeStruct((n, c, l), x3.dtype),
                grid=(c // ct,),
                in_specs=[
                    pl.BlockSpec((n, ct, l), lambda ci: (0, ci, 0)),
                    pl.BlockSpec((ct, 1), lambda ci: (ci, 0)),   # gamma
                    pl.BlockSpec((ct, 1), lambda ci: (ci, 0)),   # beta
                ],
                out_specs=pl.BlockSpec((n, ct, l), lambda ci: (0, ci, 0)),
                compiler_params=pltpu.CompilerParams(
                    dimension_semantics=("parallel",)),
            )(x3, gamma, beta)
            # TODO(synk): running_mean/running_var buffer updates are a
            # training-time side effect and are not modeled here.
            return out3.reshape(n, c, h, w)

    # ---- Path B: two sweeps (3 HBM passes), tiled over channels and lanes ----
    if l_tile is None:
        l_tile = _pick_lane_tile(l)
    if c_tile is None:
        c_tile = _pick_channel_tile(c, n, l_tile, itemsize)
    assert l % l_tile == 0 and c % c_tile == 0, (c, c_tile, l, l_tile)

    num_ct = c // c_tile
    num_lt = l // l_tile

    kernel = functools.partial(_bn_two_sweep_kernel,
                               inv_count=inv_count, eps=float(eps))

    out3 = pl.pallas_call(
        kernel,
        out_shape=jax.ShapeDtypeStruct((n, c, l), x3.dtype),
        grid=(num_ct, 2, num_lt),
        in_specs=[
            # activation block: full batch, one channel tile, one lane tile
            pl.BlockSpec((n, c_tile, l_tile), lambda ci, p, t: (0, ci, t)),
            pl.BlockSpec((c_tile, 1), lambda ci, p, t: (ci, 0)),   # gamma
            pl.BlockSpec((c_tile, 1), lambda ci, p, t: (ci, 0)),   # beta
        ],
        # During sweep 0 (p == 0) every step maps to lane-tile 0, so the output
        # block stays resident and is only written back after sweep 1 fills it.
        out_specs=pl.BlockSpec((n, c_tile, l_tile),
                               lambda ci, p, t: (0, ci, t * p)),
        scratch_shapes=[
            pltpu.VMEM((c_tile, l_tile), jnp.float32),   # per-channel sum partials
            pltpu.VMEM((c_tile, l_tile), jnp.float32),   # per-channel sumsq partials
            pltpu.VMEM((c_tile, 1), jnp.float32),        # scale = gamma * rsqrt(var+eps)
            pltpu.VMEM((c_tile, 1), jnp.float32),        # shift = beta - mean * scale
        ],
        compiler_params=pltpu.CompilerParams(
            dimension_semantics=("parallel", "arbitrary", "arbitrary")),
    )(x3, gamma, beta)

    # TODO(synk): running_mean/running_var buffer updates are a training-time
    # side effect (not part of the returned tensor) and are not modeled here.
    return out3.reshape(n, c, h, w)


# --------------------------------------------------------------------------
# Pure-JAX reference and self-test
# --------------------------------------------------------------------------
def _reference(x_nchw, gamma, beta, eps=EPS):
    xf = x_nchw.astype(jnp.float32)
    mean = jnp.mean(xf, axis=(0, 2, 3), keepdims=True)
    var = jnp.mean((xf - mean) ** 2, axis=(0, 2, 3), keepdims=True)
    y = (xf - mean) * jax.lax.rsqrt(var + eps)
    y = y * gamma.reshape(1, -1, 1, 1).astype(jnp.float32) \
        + beta.reshape(1, -1, 1, 1).astype(jnp.float32)
    return y.astype(x_nchw.dtype)


if __name__ == "__main__":
    key = jax.random.PRNGKey(0)
    k1, k2, k3, k4, k5 = jax.random.split(key, 5)

    # ---- Test 1: module spec shape (inplanes=4, bn_names=["normal","adv"]) ----
    # Small slab -> exercises the single-pass path with full-C blocks.
    bn_names = ["normal", "adv"]
    bn_names_dict = {nm: i for i, nm in enumerate(bn_names)}
    N, C, H, W = 2, 4, 16, 16
    x = jax.random.normal(k1, (N, C, H, W), dtype=jnp.float32)
    params = {
        "weight": 1.0 + 0.1 * jax.random.normal(k2, (len(bn_names), C), jnp.float32),
        "bias": 0.1 * jax.random.normal(k3, (len(bn_names), C), jnp.float32),
    }
    out = batch_norm_multiple_forward(x, "adv", params, bn_names_dict)
    out = jax.block_until_ready(out)
    idx = bn_names_dict["adv"]
    ref = _reference(x, params["weight"][idx], params["bias"][idx])
    assert out.shape == x.shape and out.dtype == x.dtype
    assert jnp.allclose(out, ref, atol=1e-4, rtol=1e-4)

    # ---- Test 2: bn_names=None path + forced two-sweep multi-tile grid ----
    N2, C2, H2, W2 = 2, 16, 16, 16
    x2 = jax.random.normal(k4, (N2, C2, H2, W2), dtype=jnp.float32)
    params2 = {
        "weight": 1.0 + 0.1 * jax.random.normal(k5, (1, C2), jnp.float32),
        "bias": 0.1 * jax.random.normal(k2, (1, C2), jnp.float32),
    }
    out2 = batch_norm_multiple_forward(x2, None, params2, None,
                                       c_tile=8, l_tile=128)
    out2 = jax.block_until_ready(out2)
    ref2 = _reference(x2, params2["weight"][0], params2["bias"][0])
    assert jnp.allclose(out2, ref2, atol=1e-4, rtol=1e-4)

    # ---- Test 3: two-sweep path with auto tiling (budget forced to 0) ----
    out2b = batch_norm_multiple_forward(x2, None, params2, None,
                                        single_pass_budget_bytes=0)
    out2b = jax.block_until_ready(out2b)
    assert jnp.allclose(out2b, ref2, atol=1e-4, rtol=1e-4)

    # ---- Test 4: bf16 activations (halved HBM traffic, f32 statistics inside) ----
    x3 = jax.random.normal(k3, (2, 16, 16, 16), dtype=jnp.bfloat16)
    params3 = {
        "weight": 1.0 + 0.1 * jax.random.normal(k1, (len(bn_names), 16), jnp.float32),
        "bias": 0.1 * jax.random.normal(k4, (len(bn_names), 16), jnp.float32),
    }
    out3 = batch_norm_multiple_forward(x3, "normal", params3, bn_names_dict)
    out3 = jax.block_until_ready(out3)
    ref3 = _reference(x3, params3["weight"][0], params3["bias"][0])
    assert out3.dtype == jnp.bfloat16
    assert jnp.allclose(out3.astype(jnp.float32), ref3.astype(jnp.float32),
                        atol=5e-2, rtol=5e-2)

    print("KERNEL_OK")
</pallas_src>

<mosaic_0001>
module attributes {stable_mosaic.version = 11 : i64} {
  func.func @_bn_single_pass_kernel(%arg0: i32, %arg1: memref<2x4x256xf32, #tpu.memory_space<vmem>>, %arg2: memref<4x1xf32, #tpu.memory_space<vmem>>, %arg3: memref<4x1xf32, #tpu.memory_space<vmem>>, %arg4: memref<2x4x256xf32, #tpu.memory_space<vmem>>) attributes {dimension_semantics = [#tpu.dimension_semantics<parallel>], iteration_bounds = array<i64: 1>, scalar_prefetch = 0 : i64, scratch_operands = 0 : i64, tpu.core_type = #tpu.core_type<tc>, window_params = [{transform_indices = @transform_0, window_bounds = array<i64: 2, 4, 256>}, {transform_indices = @transform_1, window_bounds = array<i64: 4, 1>}, {transform_indices = @transform_2, window_bounds = array<i64: 4, 1>}, {transform_indices = @transform_3, window_bounds = array<i64: 2, 4, 256>}]} {
    %c0 = arith.constant 0 : index
    %c0_0 = arith.constant 0 : index
    %c0_1 = arith.constant 0 : index
    %0 = vector.load %arg1[%c0, %c0_0, %c0_1] : memref<2x4x256xf32, #tpu.memory_space<vmem>>, vector<2x4x256xf32>
    %cst = arith.constant dense<0.000000e+00> : vector<4x256xf32>
    %1 = vector.multi_reduction <add>, %0, %cst [0] : vector<2x4x256xf32> to vector<4x256xf32>
    %2 = arith.mulf %0, %0 : vector<2x4x256xf32>
    %cst_2 = arith.constant dense<0.000000e+00> : vector<4x256xf32>
    %3 = vector.multi_reduction <add>, %2, %cst_2 [0] : vector<2x4x256xf32> to vector<4x256xf32>
    %cst_3 = arith.constant dense<0.000000e+00> : vector<4xf32>
    %4 = vector.multi_reduction <add>, %1, %cst_3 [1] : vector<4x256xf32> to vector<4xf32>
    %5 = vector.shape_cast %4 : vector<4xf32> to vector<4x1xf32>
    %cst_4 = arith.constant dense<0.000000e+00> : vector<4xf32>
    %6 = vector.multi_reduction <add>, %3, %cst_4 [1] : vector<4x256xf32> to vector<4xf32>
    %7 = vector.shape_cast %6 : vector<4xf32> to vector<4x1xf32>
    %cst_5 = arith.constant 0.001953125 : f32
    %8 = vector.broadcast %cst_5 : f32 to vector<4x1xf32>
    %9 = arith.mulf %5, %8 : vector<4x1xf32>
    %cst_6 = arith.constant 0.001953125 : f32
    %10 = vector.broadcast %cst_6 : f32 to vector<4x1xf32>
    %11 = arith.mulf %7, %10 : vector<4x1xf32>
    %12 = arith.mulf %9, %9 : vector<4x1xf32>
    %13 = arith.subf %11, %12 : vector<4x1xf32>
    %cst_7 = arith.constant 0.000000e+00 : f32
    %14 = vector.broadcast %cst_7 : f32 to vector<4x1xf32>
    %15 = arith.maximumf %13, %14 : vector<4x1xf32>
    %cst_8 = arith.constant 9.99999974E-6 : f32
    %16 = vector.broadcast %cst_8 : f32 to vector<4x1xf32>
    %17 = arith.addf %15, %16 : vector<4x1xf32>
    %18 = math.rsqrt %17 : vector<4x1xf32>
    %c0_9 = arith.constant 0 : index
    %c0_10 = arith.constant 0 : index
    %19 = vector.load %arg2[%c0_9, %c0_10] : memref<4x1xf32, #tpu.memory_space<vmem>>, vector<4x1xf32>
    %20 = arith.mulf %19, %18 : vector<4x1xf32>
    %c0_11 = arith.constant 0 : index
    %c0_12 = arith.constant 0 : index
    %21 = vector.load %arg3[%c0_11, %c0_12] : memref<4x1xf32, #tpu.memory_space<vmem>>, vector<4x1xf32>
    %22 = arith.mulf %9, %20 : vector<4x1xf32>
    %23 = arith.subf %21, %22 : vector<4x1xf32>
    %24 = vector.shape_cast %20 : vector<4x1xf32> to vector<1x4x1xf32>
    %25 = vector.broadcast %24 : vector<1x4x1xf32> to vector<2x4x256xf32>
    %26 = arith.mulf %0, %25 : vector<2x4x256xf32>
    %27 = vector.shape_cast %23 : vector<4x1xf32> to vector<1x4x1xf32>
    %28 = vector.broadcast %27 : vector<1x4x1xf32> to vector<2x4x256xf32>
    %29 = arith.addf %26, %28 : vector<2x4x256xf32>
    %c0_13 = arith.constant 0 : index
    %c0_14 = arith.constant 0 : index
    %c0_15 = arith.constant 0 : index
    %30 = vector.load %arg4[%c0_13, %c0_14, %c0_15] : memref<2x4x256xf32, #tpu.memory_space<vmem>>, vector<2x4x256xf32>
    tpu.vector_store %arg4[%c0_13, %c0_14, %c0_15], %29 {strides = array<i32>} : memref<2x4x256xf32, #tpu.memory_space<vmem>>, vector<2x4x256xf32>,
    return
  }
  func.func @transform_0(%arg0: i32) -> (i32, i32, i32) {
    %c0_i32 = arith.constant 0 : i32
    %c0_i32_0 = arith.constant 0 : i32
    %c0_i32_1 = arith.constant 0 : i32
    return %c0_i32, %arg0, %c0_i32_0 : i32, i32, i32
  }
  func.func @transform_1(%arg0: i32) -> (i32, i32) {
    %c0_i32 = arith.constant 0 : i32
    %c0_i32_0 = arith.constant 0 : i32
    return %arg0, %c0_i32 : i32, i32
  }
  func.func @transform_2(%arg0: i32) -> (i32, i32) {
    %c0_i32 = arith.constant 0 : i32
    %c0_i32_0 = arith.constant 0 : i32
    return %arg0, %c0_i32 : i32, i32
  }
  func.func @transform_3(%arg0: i32) -> (i32, i32, i32) {
    %c0_i32 = arith.constant 0 : i32
    %c0_i32_0 = arith.constant 0 : i32
    %c0_i32_1 = arith.constant 0 : i32
    return %c0_i32, %arg0, %c0_i32_0 : i32, i32, i32
  }
}

</mosaic_0001>

<bundles_post_ra>
// kernel: tpu_custom_call.1
= control target key start
LH: loop header
LB: loop body
LE: loop exit
PB: predicated region body
PF: predicated region fallthrough
CT: control target
= control target key end

     0   :  { %8 = vsyncpa [#allocation3], 0  ;;  %s239_s0 = inlined_call_operand.hbm [shape: f32[2,4,256], index: 0, kind: input, shape index: {}]   ;;  %s240_s1 = inlined_call_operand.vmem [shape: f32[4,1], index: 1, kind: input, shape index: {}]   ;;  %s241_s2 = inlined_call_operand.vmem [shape: f32[4,1], index: 2, kind: input, shape index: {}]   ;;  %s242_s3 = inlined_call_operand.hbm [shape: f32[2,4,256], index: 3, kind: output, shape index: {}]  }
   0x1   :  { %9 = vsyncpa [#allocation4], 0  ;;  %s183_s12 = smov [#allocation2]  }
   0x2   :  { %s15_s13 = sshll.u32 %s183_s12, 4  ;;  %s16_s13 = int_to_ptr.vmem [resolvable:$true] %s15_s13 }
   0x3   :  { %s147_s14 = scalar_lea.vmem %s16_s13, 256  ;;  %p152_p1 = scmp.lt.s32.totalorder %s16_s13, %s16_s13 }
   0x4   :  { %p148_p0 = scmp.ne.s32.totalorder %s16_s13, %s147_s14  ;;  %p153_p2 = scmp.lt.s32.totalorder %s147_s14, %s147_s14 }
   0x6   :  { %p154_p3 = por %p153_p2, %p152_p1 }
   0x8   :  { %p155_p4 = pnand %p154_p3, %p148_p0 }
   0xa   :  { %158 = shalt.err (!%p155_p4)
}
   0xb   :  { %s184_s15 = smov 128   ;;  %s185_s16 = smov 8  }
   0xc   :  { %21 = dma.hbm_to_vmem [thread:$0]  %s239_s0, 256, %s16_s13, [#allocation3], %s184_s15, %s184_s15, %s185_s16  }
   0xd   :  { %179 = dma.done.wait [#allocation3], 256  }
   0xe   :  { %180 = vsyncadd [#allocation3], 4294967040  ;;  %vm37_vm0 = vcmask 1043456   ;;  %v29_v0 = vld [vmem:[#allocation2] sm:$0xff]  ;;  %v30_v1 = vld [vmem:[#allocation2 + $0x8] sm:$0xff]  ;;  %v186_v26 = vmov 0   ;;  %v87_v43 = vlaneseq }
   0xf   :  { %v33_v2 = vcombine.high %v29_v0, %v29_v0  ;;  %v34_v3 = vcombine.high %v30_v1, %v30_v1  ;;  %v38_v4 = vsel %vm37_vm0, %v29_v0, 0.0  ;;  %v39_v5 = vsel %vm37_vm0, %v30_v1, 0.0  ;;  %133 = vset.pattern.permute.xlu1 %v186_v26  ;;  %134 = vset.pattern.permute.xlu0 %v186_v26  ;;  %v75_v35 = vld [vmem:[%s240_s1] sm:$0xf]  ;;  %s188_s1 = smov [#allocation5]  }
  0x10   :  { %v40_v6 = vadd.f32 %v39_v5, %v38_v4  ;;  %v44_v7 = vmul.f32 %v29_v0, %v29_v0  ;;  %v45_v8 = vmul.f32 %v30_v1, %v30_v1  ;;  %v77_v38 = vld [vmem:[%s241_s2] sm:$0xf]  ;;  %v187_v41 = vmov 839922192   ;;  %s115_s22 = sshll.u32 %s188_s1, 4  ;;  %s116_s22 = int_to_ptr.vmem [resolvable:$true] %s115_s22 }
  0x11   :  { %v41_v9 = vsel %vm37_vm0, %v33_v2, 0.0  ;;  %v42_v10 = vsel %vm37_vm0, %v34_v3, 0.0  ;;  %v85_v42 = vunpack.c.l.s4 %v187_v41  ;;  %v88_v45 = vshrl.u32 %v87_v43, 7  ;;  %s159_s2 = scalar_lea.vmem %s116_s22, 256  ;;  %p164_p6 = scmp.lt.s32.totalorder %s116_s22, %s116_s22 }
  0x12   :  { %v43_v11 = vadd.f32 %v42_v10, %v41_v9  ;;  %v58_v12 = vsel %vm37_vm0, %v40_v6, 0.0  ;;  %v48_v13 = vcombine.high %v44_v7, %v44_v7  ;;  %v49_v14 = vcombine.high %v45_v8, %v45_v8  ;;  %p160_p5 = scmp.ne.s32.totalorder %s116_s22, %s159_s2  ;;  %p165_p7 = scmp.lt.s32.totalorder %s159_s2, %s159_s2 }
  0x13   :  { %v52_v15 = vsel %vm37_vm0, %v44_v7, 0.0  ;;  %v53_v16 = vsel %vm37_vm0, %v45_v8, 0.0  ;;  %v86_v44 = vunpack.c.0.s8 %v85_v42 }
  0x14   :  { %v59_v17 = vsel %vm37_vm0, %v43_v11, 0.0  ;;  %v54_v18 = vadd.f32 %v53_v16, %v52_v15  ;;  %v55_v19 = vsel %vm37_vm0, %v48_v13, 0.0  ;;  %v56_v20 = vsel %vm37_vm0, %v49_v14, 0.0  ;;  %p166_p8 = por %p165_p7, %p164_p6 }
  0x15   :  { %v60_v21 = vadd.f32 %v59_v17, %v58_v12  ;;  %v57_v22 = vadd.f32 %v56_v20, %v55_v19  ;;  %v89_v46 = vsub.s32 %v86_v44, %v88_v45 }
  0x16   :  { %v63_v23 = vsel %vm37_vm0, %v54_v18, 0.0  ;;  %p167_p9 = pnand %p166_p8, %p160_p5 }
  0x17   :  { %61 = vadd.xlane.f32.xlu0 %v60_v21  ;;  %v64_v24 = vsel %vm37_vm0, %v57_v22, 0.0 }
  0x18   :  { %v65_v25 = vadd.f32 %v64_v24, %v63_v23 }
  0x1b   :  { %66 = vadd.xlane.f32.xlu0 %v65_v25 }
  0xa0   :  { %v62_v27 = vpop.xlane.xlu0 %61 }
  0xa1   :  { %v68_v28 = vmul.f32 0.001953125, %v62_v27 }
  0xa3   :  { %v70_v30 = vmul.f32 %v68_v28, %v68_v28 }
  0xa4   :  { %v67_v29 = vpop.xlane.xlu0 %66 }
  0xa5   :  { %v69_v31 = vmul.f32 0.001953125, %v67_v29 }
  0xa7   :  { %v71_v32 = vsub.f32 %v69_v31, %v70_v30 }
  0xa9   :  { %v72_v33 = vmax.f32 %v71_v32, 0.0 }
  0xab   :  { %v73_v34 = vadd.f32 1e-05, %v72_v33 }
  0xad   :  { %137 = vrsqrt.f32 %v73_v34 }
  0xba   :  { %v138_v36 = vpop.eup %137 }
  0xbb   :  { %v76_v37 = vmul.f32 %v138_v36, %v75_v35 }
  0xbd   :  { %82 = vperm.xlu1 %133, %v76_v37   ;;  %v78_v39 = vmul.f32 %v76_v37, %v68_v28 }
  0xbf   :  { %v79_v40 = vsub.f32 %v77_v38, %v78_v39 }
  0xc1   :  { %96 = vperm.xlu1 %133, %v79_v40  }
 0x138   :  { %v83_v47 = vpop.permute.xlu1 %82 }
 0x139   :  { %v90_v48 = vrot.slane %v83_v47, %v89_v46 }
 0x13b   :  { %v92_v50 = vmul.f32 %v90_v48, %v29_v0  ;;  %v93_v51 = vmul.f32 %v90_v48, %v30_v1 }
 0x13c   :  { %v97_v49 = vpop.permute.xlu1 %96 }
 0x13d   :  { %v104_v52 = vrot.slane %v97_v49, %v89_v46 }
 0x13f   :  { %v106_v53 = vadd.f32 %v104_v52, %v92_v50  ;;  %v107_v54 = vadd.f32 %v104_v52, %v93_v51 }
 0x141   :  { %108 = vst [vmem:[#allocation5] sm:$0xff] %v106_v53  ;;  %109 = vst [vmem:[#allocation5 + $0x8] sm:$0xff] %v107_v54 }
 0x142   :  { %170 = shalt.err (!%p167_p9)
}
 0x143   :  { %121 = dma.vmem_to_hbm [thread:$0]  %s116_s22, 256, %s242_s3, [#allocation4], %s184_s15, %s184_s15, %s185_s16  }
 0x144   :  { %181 = dma.done.wait [#allocation4], 256  }
 0x145   :  { %182 = vsyncadd [#allocation4], 4294967040 }
 0x146   :  { %125 = vsyncpa [#allocation3], 1 }
 0x147   :  { %126 = vsyncpa [#allocation4], 1 }

</bundles_post_ra>
